<compile_context>
chip_gen: v5e
topology: v5e:2x2
jax: 0.10.0
libtpu: 0.0.40
codegen_flags: <defaults>
</compile_context>

<pallas_src>
import functools

import jax
import jax.numpy as jnp
from jax.experimental import pallas as pl
from jax.experimental.pallas import tpu as pltpu


def _psg_scale_kernel(q_ref, p_ref, wp_ref, bp_ref, out_ref):
    """One (batch item b, passage-group tile i) grid step.

    q_ref  : (1, 1, D)          f32  query embedding of batch item b (resident over i)
    p_ref  : (tile_n, 1, S, H)  bf16 tokens of passage groups [i*tile_n,(i+1)*tile_n) of b
    wp_ref : (H, D)             bf16 passage dense head   (resident across all steps)
    bp_ref : (1, D)             f32  passage dense bias   (resident across all steps)
    out_ref: (1, tile_n, D)     f32  scaled passage embeddings for (b, tile i)
    """
    S = p_ref.shape[2]
    tok = p_ref[:, 0]                                                  # (tile_n, S, H) bf16
    # mean-pool over tokens: accumulate in f32 (v5e-safe elementwise path)
    pooled = jnp.sum(tok.astype(jnp.float32), axis=1) * (1.0 / S)      # (tile_n, H) f32
    # dense head on the MXU: bf16 operands, f32 accumulation
    p_emb = jnp.dot(pooled.astype(jnp.bfloat16), wp_ref[...],
                    preferred_element_type=jnp.float32) + bp_ref[...]  # (tile_n, D) f32
    # scaled_psg_embeddings[b, i*tile_n + ii, :] = q_emb[b, :] * p_emb[ii, :]
    out_ref[0] = (q_ref[0] * p_emb).astype(out_ref.dtype)


def _pick_tile_n(n, S, H, D, *, tok_bytes=2, budget_bytes=24 * 1024 * 1024):
    """Largest passage-group tile that (a) divides n, (b) keeps the double-buffered
    token tile + output tile under a v7x-safe VMEM budget, and (c) keeps the output
    block tile-aligned (tile_n % 8 == 0 or tile_n == n)."""
    resident = H * D * tok_bytes + 4 * D * 4                  # wp + bp + q block (approx)
    per_group = 2 * S * H * tok_bytes + 2 * D * 4             # 2x token rows + 2x out rows
    cap = max(1, (budget_bytes - resident) // per_group)
    best = None
    for t in range(1, n + 1):
        if n % t == 0 and t <= cap and (t % 8 == 0 or t == n):
            best = t
    if best is None:
        # TODO(synk): n too large for one tile under the budget -> needs an inner
        # passage loop; fall back to the always-legal full-axis block.
        best = n
    return best


@functools.partial(jax.jit, static_argnames=("tile_n",))
def query_specific_cluster_forward(q_tok, p_tok, labels, wq, bq, wp, bp, *, tile_n=None):
    """q_tok: (B,S,H); p_tok: (n,B,S,H); labels: (B,n) (only n is read, as in torch)."""
    n = labels.shape[1]
    assert p_tok.shape[0] == n
    B, S, H = q_tok.shape
    D = wq.shape[1]

    # ---- query encoder: tiny, runs once in plain XLA, stays f32 ----
    q_emb = jnp.mean(q_tok.astype(jnp.float32), axis=1) @ wq.astype(jnp.float32) + bq
    q_emb = q_emb.reshape(B, 1, D)        # (B,1,D) so the kernel block is a legal (1,1,D)

    # ---- passage tokens streamed in bf16 (upstream encoder activations are
    #      normally bf16 already; the astype is then a no-op) ----
    p_stream = p_tok.astype(jnp.bfloat16)
    wp_bf16 = wp.astype(jnp.bfloat16)
    bp_f32 = bp.astype(jnp.float32)

    if tile_n is None:
        tile_n = _pick_tile_n(n, S, H, D)
    assert n % tile_n == 0 and (tile_n % 8 == 0 or tile_n == n)
    grid = (B, n // tile_n)

    # VMEM: double-buffered token + output tiles plus resident weights/bias/q.
    est = (2 * tile_n * S * H * 2 + 2 * tile_n * D * 4
           + H * D * 2 + 2 * D * 4 + 2 * D * 4)
    vmem_limit = int(min(64 * 1024 * 1024,
                         max(32 * 1024 * 1024, 2 * est + 4 * 1024 * 1024)))

    cost = pl.CostEstimate(
        flops=int(n * B * S * H + 2 * n * B * H * D + 2 * n * B * D),
        transcendentals=0,
        bytes_accessed=int(n * B * S * H * 2 + H * D * 2 + B * D * 4 + D * 4
                           + B * n * D * 4),
    )

    out = pl.pallas_call(
        _psg_scale_kernel,
        out_shape=jax.ShapeDtypeStruct((B, n, D), jnp.float32),
        grid_spec=pltpu.PrefetchScalarGridSpec(
            num_scalar_prefetch=0,
            grid=grid,
            in_specs=[
                pl.BlockSpec((1, 1, D), lambda b, i: (b, 0, 0)),             # q_emb (per-b)
                pl.BlockSpec((tile_n, 1, S, H), lambda b, i: (i, b, 0, 0)),  # token tile
                pl.BlockSpec((H, D), lambda b, i: (0, 0)),                   # wp (resident)
                pl.BlockSpec((1, D), lambda b, i: (0, 0)),                   # bp (resident)
            ],
            out_specs=pl.BlockSpec((1, tile_n, D), lambda b, i: (b, i, 0)),
        ),
        compiler_params=pltpu.CompilerParams(
            dimension_semantics=("parallel", "parallel"),   # v7x megacore splits passages
            vmem_limit_bytes=vmem_limit,
        ),
        cost_estimate=cost,
    )(q_emb, p_stream, wp_bf16, bp_f32)

    return out


def _reference(q_tok, p_tok, wq, bq, wp, bp):
    """Pure-JAX reference mirroring the kernel's bf16-stream / f32-accumulate numerics."""
    q_emb = jnp.mean(q_tok.astype(jnp.float32), axis=1) @ wq.astype(jnp.float32) + bq  # (B,D)
    S = p_tok.shape[2]
    pooled = jnp.sum(p_tok.astype(jnp.bfloat16).astype(jnp.float32), axis=2) * (1.0 / S)  # (n,B,H)
    p_emb = jnp.einsum("nbh,hd->nbd", pooled.astype(jnp.bfloat16), wp.astype(jnp.bfloat16),
                       preferred_element_type=jnp.float32) + bp.astype(jnp.float32)       # (n,B,D)
    p_emb = jnp.transpose(p_emb, (1, 0, 2))                                               # (B,n,D)
    return q_emb[:, None, :] * p_emb


if __name__ == "__main__":
    # Small, lane/tile-friendly shapes: H, D multiples of 128; n a multiple of 8 so
    # an 8-group tile gives full 8-sublane, unmasked output stores.
    B, n, S, H, D = 2, 16, 8, 128, 128
    key = jax.random.PRNGKey(0)
    k1, k2, k3, k4, k5, k6 = jax.random.split(key, 6)

    # stand-in token embeddings from the query / passage transformers
    q_tok = jax.random.normal(k1, (B, S, H), dtype=jnp.float32)
    p_tok = jax.random.normal(k2, (n, B, S, H), dtype=jnp.float32).astype(jnp.bfloat16)
    labels = jnp.zeros((B, n), dtype=jnp.int32)      # forward reads only labels.shape[1]

    # encoder dense heads (pooling + dense projection of each sentence model)
    wq = jax.random.normal(k3, (H, D), dtype=jnp.float32) / (H ** 0.5)
    bq = jax.random.normal(k4, (1, D), dtype=jnp.float32) * 0.01
    wp = (jax.random.normal(k5, (H, D), dtype=jnp.float32) / (H ** 0.5)).astype(jnp.bfloat16)
    bp = jax.random.normal(k6, (1, D), dtype=jnp.float32) * 0.01

    ref = _reference(q_tok, p_tok, wq, bq, wp, bp)

    # explicit tiling: grid = (B, n // 8) = (2, 2) exercises both grid axes / index maps
    out = query_specific_cluster_forward(q_tok, p_tok, labels, wq, bq, wp, bp, tile_n=8)
    out = jax.block_until_ready(out)
    assert out.shape == (B, n, D)
    assert jnp.allclose(out, ref, atol=1e-2, rtol=1e-2)

    # auto-picked (VMEM-budgeted) tile
    out_auto = query_specific_cluster_forward(q_tok, p_tok, labels, wq, bq, wp, bp)
    out_auto = jax.block_until_ready(out_auto)
    assert jnp.allclose(out_auto, ref, atol=1e-2, rtol=1e-2)

    print("KERNEL_OK")
</pallas_src>

<mosaic_0001>
module attributes {stable_mosaic.version = 11 : i64} {
  func.func @_psg_scale_kernel(%arg0: i32, %arg1: i32, %arg2: memref<1x1x128xf32, #tpu.memory_space<vmem>>, %arg3: memref<8x1x8x128xbf16, #tpu.memory_space<vmem>>, %arg4: memref<128x128xbf16, #tpu.memory_space<vmem>>, %arg5: memref<1x128xf32, #tpu.memory_space<vmem>>, %arg6: memref<1x8x128xf32, #tpu.memory_space<vmem>>) attributes {dimension_semantics = [#tpu.dimension_semantics<parallel>, #tpu.dimension_semantics<parallel>], iteration_bounds = array<i64: 2, 2>, scalar_prefetch = 0 : i64, scratch_operands = 0 : i64, tpu.core_type = #tpu.core_type<tc>, window_params = [{transform_indices = @transform_0, window_bounds = array<i64: 1, 1, 128>}, {transform_indices = @transform_1, window_bounds = array<i64: 8, 1, 8, 128>}, {pipeline_mode = #tpu.pipeline_mode<synchronous>, transform_indices = @transform_2, window_bounds = array<i64: 128, 128>}, {pipeline_mode = #tpu.pipeline_mode<synchronous>, transform_indices = @transform_3, window_bounds = array<i64: 1, 128>}, {transform_indices = @transform_4, window_bounds = array<i64: 1, 8, 128>}]} {
    %c0 = arith.constant 0 : index
    %c0_0 = arith.constant 0 : index
    %c0_1 = arith.constant 0 : index
    %c0_2 = arith.constant 0 : index
    %0 = vector.load %arg3[%c0, %c0_0, %c0_1, %c0_2] : memref<8x1x8x128xbf16, #tpu.memory_space<vmem>>, vector<8x1x8x128xbf16>
    %1 = vector.shape_cast %0 : vector<8x1x8x128xbf16> to vector<8x8x128xbf16>
    %2 = arith.extf %1 : vector<8x8x128xbf16> to vector<8x8x128xf32>
    %cst = arith.constant dense<0.000000e+00> : vector<8x128xf32>
    %3 = vector.multi_reduction <add>, %2, %cst [1] : vector<8x8x128xf32> to vector<8x128xf32>
    %cst_3 = arith.constant 1.250000e-01 : f32
    %4 = vector.broadcast %cst_3 : f32 to vector<8x128xf32>
    %5 = arith.mulf %3, %4 : vector<8x128xf32>
    %6 = arith.truncf %5 : vector<8x128xf32> to vector<8x128xbf16>
    %c0_4 = arith.constant 0 : index
    %c0_5 = arith.constant 0 : index
    %7 = vector.load %arg4[%c0_4, %c0_5] : memref<128x128xbf16, #tpu.memory_space<vmem>>, vector<128x128xbf16>
    %cst_6 = arith.constant dense<0.000000e+00> : vector<8x128xf32>
    %8 = tpu.matmul %6, %7, %cst_6 {dimension_numbers = #tpu.dot_dimension_numbers<[1], [0], [0], [1], [0, 0, 1, 1], [], []>} : vector<8x128xbf16>, vector<128x128xbf16>, vector<8x128xf32> -> vector<8x128xf32>
    %c0_7 = arith.constant 0 : index
    %c0_8 = arith.constant 0 : index
    %9 = vector.load %arg5[%c0_7, %c0_8] : memref<1x128xf32, #tpu.memory_space<vmem>>, vector<1x128xf32>
    %10 = vector.broadcast %9 : vector<1x128xf32> to vector<8x128xf32>
    %11 = arith.addf %8, %10 : vector<8x128xf32>
    %c0_9 = arith.constant 0 : index
    %c0_10 = arith.constant 0 : index
    %c0_11 = arith.constant 0 : index
    %12 = vector.load %arg2[%c0_9, %c0_10, %c0_11] : memref<1x1x128xf32, #tpu.memory_space<vmem>>, vector<1x1x128xf32>
    %13 = vector.shape_cast %12 : vector<1x1x128xf32> to vector<1x128xf32>
    %14 = vector.broadcast %13 : vector<1x128xf32> to vector<8x128xf32>
    %15 = arith.mulf %14, %11 : vector<8x128xf32>
    %c0_12 = arith.constant 0 : index
    %c0_13 = arith.constant 0 : index
    %c0_14 = arith.constant 0 : index
    %16 = vector.load %arg6[%c0_12, %c0_13, %c0_14] : memref<1x8x128xf32, #tpu.memory_space<vmem>>, vector<1x8x128xf32>
    %17 = vector.shape_cast %16 : vector<1x8x128xf32> to vector<8x128xf32>
    %18 = vector.shape_cast %15 : vector<8x128xf32> to vector<1x8x128xf32>
    tpu.vector_store %arg6[%c0_12, %c0_13, %c0_14], %18 {strides = array<i32>} : memref<1x8x128xf32, #tpu.memory_space<vmem>>, vector<1x8x128xf32>,
    return
  }
  func.func @transform_0(%arg0: i32, %arg1: i32) -> (i32, i32, i32) {
    %c0_i32 = arith.constant 0 : i32
    %c0_i32_0 = arith.constant 0 : i32
    %c0_i32_1 = arith.constant 0 : i32
    return %arg0, %c0_i32, %c0_i32_0 : i32, i32, i32
  }
  func.func @transform_1(%arg0: i32, %arg1: i32) -> (i32, i32, i32, i32) {
    %c0_i32 = arith.constant 0 : i32
    %c0_i32_0 = arith.constant 0 : i32
    %c0_i32_1 = arith.constant 0 : i32
    return %arg1, %arg0, %c0_i32, %c0_i32_0 : i32, i32, i32, i32
  }
  func.func @transform_2(%arg0: i32, %arg1: i32) -> (i32, i32) {
    %c0_i32 = arith.constant 0 : i32
    %c0_i32_0 = arith.constant 0 : i32
    %c0_i32_1 = arith.constant 0 : i32
    return %c0_i32, %c0_i32_0 : i32, i32
  }
  func.func @transform_3(%arg0: i32, %arg1: i32) -> (i32, i32) {
    %c0_i32 = arith.constant 0 : i32
    %c0_i32_0 = arith.constant 0 : i32
    %c0_i32_1 = arith.constant 0 : i32
    return %c0_i32, %c0_i32_0 : i32, i32
  }
  func.func @transform_4(%arg0: i32, %arg1: i32) -> (i32, i32, i32) {
    %c0_i32 = arith.constant 0 : i32
    %c0_i32_0 = arith.constant 0 : i32
    return %arg0, %arg1, %c0_i32 : i32, i32, i32
  }
}

</mosaic_0001>

<bundles_post_ra>
// kernel: query_specific_cluster_forward.1
= control target key start
LH: loop header
LB: loop body
LE: loop exit
PB: predicated region body
PF: predicated region fallthrough
CT: control target
= control target key end

     0   :  { %s1131_s0 = inlined_call_operand.vmem [shape: f32[2,1,128], index: 0, kind: input, shape index: {}]   ;;  %s1132_s1 = inlined_call_operand.vmem [shape: bf16[16,2,8,128], index: 1, kind: input, shape index: {}]   ;;  %s1133_s2 = inlined_call_operand.hbm [shape: bf16[128,128], index: 2, kind: input, shape index: {}]   ;;  %s1134_s3 = inlined_call_operand.vmem [shape: f32[1,128], index: 3, kind: input, shape index: {}]   ;;  %s1135_s4 = inlined_call_operand.hbm [shape: f32[2,16,128], index: 4, kind: output, shape index: {}]  }
   0x1   :  { %1137 = sst [smem:[#allocation10_spill]] %s1133_s2 }
   0x2   :  { %9 = vsyncpa [#allocation4], 0 }
   0x3   :  { %10 = vsyncpa [#allocation5], 0 }
   0x4   :  { %12 = vsyncpa [#allocation5 + $0x1], 0  ;;  %s958_s15 = smov 0   ;;  %s960_s16 = smov 0  }
   0x5   :  { %s962_s17 = smov 0   ;;  %s964_s18 = smov 0  }
   0x6   :  { %s966_s19 = smov 0   ;;  %s968_s20 = smov 0  }
   0x7   :  { %s970_s21 = smov 0   ;;  %s972_s22 = smov 0  }
   0x8 LB: > { %s636_s23 = sadd.s32 4294967295, %s928_s22   ;;  %s637_s24 = sadd.s32 4294967294, %s928_s22   ;;  %s928_s22 = sphi %s972_s22, %s18_s22   ;;  %s924_s21 = sphi %s970_s21, %s1152_s21   ;;  %s920_s20 = sphi %s968_s20, %s1151_s20   ;;  %s916_s19 = sphi %s966_s19, %s1150_s19   ;;  %s912_s18 = sphi %s964_s18, %s1149_s18   ;;  %s908_s17 = sphi %s962_s17, %s1148_s17   ;;  %s904_s16 = sphi %s960_s16, %s1147_s16   ;;  %s900_s15 = sphi %s958_s15, %s1146_s15  }
   0x9   : > { %s27_s25 = sadd.s32 1, %s920_s20  ;;  %s30_s26 = sadd.s32 1, %s924_s21 }
   0xa   : > { %p28_p0 = scmp.ge.s32.totalorder %s27_s25, 2  ;;  %s65_s27 = sadd.s32 1, %s908_s17 }
   0xb   : > { %p72_p1 = scmp.ne.s32.totalorder %s908_s17, %s904_s16  ;;  %p73_p2 = scmp.eq.s32.totalorder %s928_s22, 0 }
   0xc   : > { %s1154_s25 = smov (%p28_p0, %s27_s25), 0  ;;  %s1156_s26 = smov (!%p28_p0, %s30_s26), %s924_s21 }
   0xd   : > { %s60_s28 = ssub.s32 %s920_s20, %s1154_s25  ;;  %p1011_p3 = por %p73_p2, %p72_p1 }
   0xe   : > { %p32_p4 = scmp.ge.s32.totalorder %s1156_s26, 2  ;;  %p146_p5 = scmp.eq.s32.totalorder %s636_s23, 3 }
   0xf   : > { %p151_p6 = scmp.ne.s32.totalorder %s904_s16, %s900_s15  ;;  %p152_p7 = scmp.eq.s32.totalorder %s637_s24, 3 }
  0x10   : > { %s1158_s26 = smov (%p32_p4, %s1156_s26), 0  ;;  %p1019_p8 = por %p146_p5, %p72_p1 }
  0x11   : > { %1139 = sst [smem:[#allocation9_spill]] %s1158_s26  ;;  %p1023_p9 = por %p152_p7, %p151_p6 }
  0x12   : > { %s61_s6 = ssub.s32 %s924_s21, %s1158_s26  ;;  %p638_p10 = scmp.ge.s32.totalorder %s928_s22, 1 }
  0x13   : > { %s62_s7 = sor.u32 %s61_s6, %s60_s28  ;;  %p159_p11 = scmp.lt.s32.totalorder %s928_s22, 5 }
  0x14   : > { %p63_p12 = scmp.eq.s32.totalorder %s62_s7, 0  ;;  %p1035_p0 = scmp.eq.s32.totalorder %s636_s23, 0 }
  0x15   : > { %p1031_p13 = pnand %p638_p10, %p159_p11  ;;  %s1144_s2 = sld [smem:[#allocation10_spill]] }
  0x16   : > { %s1040_s10 = scalar_select %p63_p12, %s908_s17, %s65_s27  }
  0x17   : > { %p720_p1 = pneg %p1031_p13  ;;  %s930_s14 = smov [#allocation3]  }
  0x18   : > { %s172_s24 = sshll.u32 %s930_s14, 4  ;;  %s931_s28 = smov 64   ;;  %s173_s24 = int_to_ptr.vmem [resolvable:$true] %s172_s24 }
  0x19   : > { %p721_p2 = pnand %p1035_p0, %p720_p1  ;;  %s932_s23 = smov 4  }
  0x1a   : > { %p640_p4 = scmp.ge.s32.totalorder %s928_s22, 4 }
  0x1b   : > { %s170_s13 = sshll.u32 %s1144_s2, 4  ;;  %s171_s13 = int_to_ptr.hbm [resolvable:$true] %s170_s13 }
  0x1c   : > { %723 = dma.hbm_to_vmem [thread:$0]  (!%p721_p2), %s171_s13, 1024, %s173_s24, [#allocation4], %s931_s28, %s931_s28, %s932_s23  }
  0x1d   : > { %185 = sbr.rel (%p640_p4) target bundleno = 48 (0x30), region = 24 }
  0x22   : > { %194 = sbr.rel (!%p1011_p3) target bundleno = 48 (0x30), region = 32  ;;  %s196_s27 = sand.u32 (%p1011_p3), 1, %s908_s17  }
  0x23   : > { %s686_s6 = sshll.u32 (%p1011_p3), %s920_s20, 4  ;;  %s641_s7 = sshll.u32 (%p1011_p3), %s196_s27, 5 }
  0x24   : > { %s201_s11 = sadd.s32 (%p1011_p3), %s924_s21, %s686_s6  ;;  %s198_s13 = scalar_lea.vmem (%p1011_p3), [#allocation2], %s641_s7 }
  0x25   : > { %s644_s12 = sshll.u32 (%p1011_p3), %s201_s11, 2 }
  0x26   : > { %s203_s26 = scalar_lea.vmem (%p1011_p3), %s1132_s1, %s644_s12 }
  0x27   : > { %v220_v0 = vld [vmem:[%s203_s26] sm:$0xf]  ;;  %v222_v1 = vld [vmem:[%s203_s26 + $0x8] sm:$0xf]  ;;  %v224_v2 = vld [vmem:[%s203_s26 + $0x10] sm:$0xf] }
  0x28   : > { %221 = vst [vmem:[%s198_s13] sm:$0xf] %v220_v0  ;;  %v226_v3 = vld [vmem:[%s203_s26 + $0x18] sm:$0xf]  ;;  %v228_v4 = vld [vmem:[%s203_s26 + $0x20] sm:$0xf] }
  0x29   : > { %223 = vst [vmem:[%s198_s13 + $0x4] sm:$0xf] %v222_v1  ;;  %v230_v5 = vld [vmem:[%s203_s26 + $0x28] sm:$0xf]  ;;  %v232_v6 = vld [vmem:[%s203_s26 + $0x30] sm:$0xf] }
  0x2a   : > { %225 = vst [vmem:[%s198_s13 + $0x8] sm:$0xf] %v224_v2  ;;  %v234_v7 = vld [vmem:[%s203_s26 + $0x38] sm:$0xf] }
  0x2b   : > { %227 = vst [vmem:[%s198_s13 + $0xc] sm:$0xf] %v226_v3 }
  0x2c   : > { %229 = vst [vmem:[%s198_s13 + $0x10] sm:$0xf] %v228_v4 }
  0x2d   : > { %231 = vst [vmem:[%s198_s13 + $0x14] sm:$0xf] %v230_v5 }
  0x2e   : > { %233 = vst [vmem:[%s198_s13 + $0x18] sm:$0xf] %v232_v6 }
  0x2f   : > { %235 = vst [vmem:[%s198_s13 + $0x1c] sm:$0xf] %v234_v7 }
  0x30 PF: > { %278 = sbr.rel (%p1031_p13) target bundleno = 220 (0xdc), region = 73  ;;  %s1061_s2 = sand.u32 (!%p1031_p13), 1, %s904_s16  }
  0x31   : > { %s646_s29 = sshll.u32 (!%p1031_p13), %s1061_s2, 5 }
  0x32   : > { %s283_s24 = scalar_lea.vmem (!%p1031_p13), [#allocation2], %s646_s29 }
  0x35   : > { %891 = dma.done.wait (%p1035_p0), [#allocation4], 1024  }
  0x36   : > { %893 = vsyncadd (%p1035_p0), [#allocation4], 4294966272  ;;  %p314_p3 = scmp.lt.s32.totalorder %s916_s19, 1  ;;  %v694_v8 = vld [vmem:[#allocation3 + $0x38] sm:$0xff]  ;;  %v693_v9 = vld [vmem:[#allocation3 + $0x30] sm:$0xff]  ;;  %vm434_vm0 = vcmask 1041409  }
  0x37   : > { %498 = vmatpush.bf16.msra.mxu0 %v694_v8  ;;  %v696_v10 = vld [vmem:[%s283_s24] sm:$0xff]   ;;  %v711_v13 = vld [vmem:[%s283_s24 + $0x8] sm:$0xff]   ;;  %v712_v14 = vld [vmem:[%s283_s24 + $0x10] sm:$0xff]   ;;  %vm436_vm1 = vcmask 1042434   ;;  %vm438_vm2 = vcmask 1043459   ;;  %vm440_vm3 = vcmask 1044484  }
  0x38   : > { %s1070_s26 = scalar_select %p314_p3, %s916_s19, 1  ;;  %v697_v11 = vunpack.c.l.bf16 %v696_v10  ;;  %v698_v12 = vunpack.c.h.bf16 %v696_v10  ;;  %v713_v15 = vld [vmem:[%s283_s24 + $0x18] sm:$0xff]   ;;  %v701_v16 = vunpack.c.l.bf16 %v711_v13  ;;  %v702_v17 = vunpack.c.h.bf16 %v711_v13  ;;  %v692_v24 = vld [vmem:[#allocation3 + $0x28] sm:$0xff]  ;;  %v691_v41 = vld [vmem:[#allocation3 + $0x20] sm:$0xff] }
  0x39   : > { %v705_v18 = vunpack.c.l.bf16 %v712_v14  ;;  %v706_v19 = vunpack.c.h.bf16 %v712_v14  ;;  %v709_v20 = vunpack.c.l.bf16 %v713_v15  ;;  %v710_v21 = vunpack.c.h.bf16 %v713_v15  ;;  %v690_v58 = vld [vmem:[#allocation3 + $0x18] sm:$0xff]  ;;  %s682_s23 = sshll.u32 %s916_s19, 1  ;;  %s648_s6 = sshll.u32 %s1061_s2, 3 }
  0x3a   : > { %s316_s9 = scalar_lea.vmem %s1131_s0, %s1070_s26  ;;  %v334_v22 = vrot.slane %v697_v11, 4  ;;  %v340_v23 = vrot.slane %v698_v12, 4  ;;  %v346_v25 = vrot.slane %v701_v16, 4  ;;  %v352_v26 = vrot.slane %v702_v17, 4  ;;  %s528_s27 = sadd.s32 %s912_s18, %s682_s23 }
  0x3b   : > { %499 = vmatpush.bf16.msra.mxu0 %v693_v9  ;;  %v358_v27 = vrot.slane %v705_v18, 4  ;;  %v364_v28 = vrot.slane %v706_v19, 4  ;;  %v370_v31 = vrot.slane %v709_v20, 4  ;;  %v376_v32 = vrot.slane %v710_v21, 4  ;;  %s683_s7 = sshll.u32 %s528_s27, 3  ;;  %s313_s19 = scalar_lea.vmem [#allocation6], %s648_s6 }
  0x3c   : > { %v335_v29 = vadd.f32 %v697_v11, %v334_v22  ;;  %v341_v30 = vadd.f32 %v698_v12, %v340_v23  ;;  %v347_v33 = vadd.f32 %v701_v16, %v346_v25  ;;  %v353_v34 = vadd.f32 %v702_v17, %v352_v26  ;;  %v689_v11 = vld [vmem:[#allocation3 + $0x10] sm:$0xff]  ;;  %s530_s29 = scalar_lea.hbm %s1135_s4, %s683_s7  ;;  %s532_s28 = sshll.u32 %s313_s19, 4  ;;  %s533_s28 = int_to_ptr.vmem [resolvable:$true] %s532_s28 }
  0x3d   : > { %v359_v35 = vadd.f32 %v705_v18, %v358_v27  ;;  %v365_v36 = vadd.f32 %v706_v19, %v364_v28  ;;  %v371_v39 = vadd.f32 %v709_v20, %v370_v31  ;;  %v377_v40 = vadd.f32 %v710_v21, %v376_v32  ;;  %v688_v28 = vld [vmem:[#allocation3 + $0x8] sm:$0xff]  ;;  %s534_s18 = sshll.u32 %s530_s29, 4  ;;  %s518_s23 = scalar_lea.sflag [#allocation5], %s1061_s2  ;;  %s535_s18 = int_to_ptr.hbm [resolvable:$true] %s534_s18 }
  0x3e   : > { %v336_v37 = vrot.slane %v335_v29, 2  ;;  %v342_v38 = vrot.slane %v341_v30, 2  ;;  %v348_v42 = vrot.slane %v347_v33, 2  ;;  %v354_v43 = vrot.slane %v353_v34, 2  ;;  %s844_s27 = sshra.s32 %s535_s18, 4  ;;  %s845_s27 = int_to_ptr.hbm [resolvable:$true] %s844_s27 }
  0x3f   : > { %500 = vmatpush.bf16.msra.mxu0 %v692_v24  ;;  %v360_v44 = vrot.slane %v359_v35, 2  ;;  %v366_v45 = vrot.slane %v365_v36, 2  ;;  %v372_v48 = vrot.slane %v371_v39, 2  ;;  %v378_v49 = vrot.slane %v377_v40, 2  ;;  %s846_s11 = scalar_lea.hbm %s845_s27, 8  ;;  %p851_p10 = scmp.lt.s32.totalorder %s845_s27, %s1135_s4 }
  0x40   : > { %v337_v46 = vadd.f32 %v336_v37, %v335_v29  ;;  %v343_v47 = vadd.f32 %v342_v38, %v341_v30  ;;  %v349_v50 = vadd.f32 %v348_v42, %v347_v33  ;;  %v355_v51 = vadd.f32 %v354_v43, %v353_v34  ;;  %v687_v38 = vld [vmem:[#allocation3] sm:$0xff]  ;;  %p847_p5 = scmp.ne.s32.totalorder %s845_s27, %s846_s11 }
  0x41   : > { %v361_v52 = vadd.f32 %v360_v44, %v359_v35  ;;  %v367_v53 = vadd.f32 %v366_v45, %v365_v36  ;;  %v373_v56 = vadd.f32 %v372_v48, %v371_v39  ;;  %v379_v57 = vadd.f32 %v378_v49, %v377_v40  ;;  %v798_v44 = vld [vmem:[%s1134_s3] ss:$0 sm:$0xff] }
  0x42   : > { %v338_v54 = vrot.slane %v337_v46, 1  ;;  %v344_v55 = vrot.slane %v343_v47, 1  ;;  %v350_v59 = vrot.slane %v349_v50, 1  ;;  %v356_v60 = vrot.slane %v355_v51, 1  ;;  %v799_v45 = vld [vmem:[%s316_s9] ss:$0 sm:$0xff]  ;;  %p848_p6 = pnand %p847_p5, %p1019_p8 }
  0x43   : > { %501 = vmatpush.bf16.msra.mxu0 %v691_v41  ;;  %v362_v61 = vrot.slane %v361_v52, 1  ;;  %v368_v62 = vrot.slane %v367_v53, 1  ;;  %v374_v1 = vrot.slane %v373_v56, 1  ;;  %v380_v2 = vrot.slane %v379_v57, 1  ;;  %s850_s9 = scalar_lea.hbm %s1135_s4, 32 }
  0x44   : > { %v339_v63 = vadd.f32 %v338_v54, %v337_v46  ;;  %v345_v0 = vadd.f32 %v344_v55, %v343_v47  ;;  %v351_v3 = vadd.f32 %v350_v59, %v349_v50  ;;  %v357_v4 = vadd.f32 %v356_v60, %v355_v51  ;;  %p849_p7 = pneg %p848_p6  ;;  %p852_p11 = scmp.lt.s32.totalorder %s850_s9, %s846_s11 }
  0x45   : > { %v363_v5 = vadd.f32 %v362_v61, %v361_v52  ;;  %v369_v6 = vadd.f32 %v368_v62, %v367_v53  ;;  %v375_v7 = vadd.f32 %v374_v1, %v373_v56  ;;  %v381_v8 = vadd.f32 %v380_v2, %v379_v57 }
  0x46   : > { %v382_v9 = vmul.f32 0.125, %v339_v63  ;;  %v383_v10 = vmul.f32 0.125, %v345_v0  ;;  %v384_v12 = vmul.f32 0.125, %v351_v3  ;;  %v385_v13 = vmul.f32 0.125, %v357_v4  ;;  %p853_p12 = por %p852_p11, %p851_p10 }
  0x47   : > { %502 = vmatpush.bf16.msra.mxu0 %v690_v58  ;;  %v386_v14 = vmul.f32 0.125, %v363_v5  ;;  %v387_v15 = vmul.f32 0.125, %v369_v6  ;;  %v388_v16 = vmul.f32 0.125, %v375_v7  ;;  %v389_v17 = vmul.f32 0.125, %v381_v8 }
  0x48   : > { %v390_v18 = vpack.c.bf16 %v382_v9, %v382_v9  ;;  %v391_v19 = vpack.c.bf16 %v383_v10, %v383_v10  ;;  %v392_v20 = vpack.c.bf16 %v384_v12, %v384_v12  ;;  %v393_v21 = vpack.c.bf16 %v385_v13, %v385_v13  ;;  %p854_p13 = pnand %p853_p12, %p849_p7 }
  0x49   : > { %v394_v22 = vpack.c.bf16 %v386_v14, %v386_v14  ;;  %v395_v23 = vpack.c.bf16 %v387_v15, %v387_v15  ;;  %v396_v24 = vpack.c.bf16 %v388_v16, %v388_v16  ;;  %v397_v25 = vpack.c.bf16 %v389_v17, %v389_v17 }
  0x4a   : > { %v426_v26 = vunpack.c.l.b16 %v390_v18  ;;  %v427_v27 = vunpack.c.l.b16 %v391_v19  ;;  %v428_v29 = vunpack.c.l.b16 %v392_v20  ;;  %v429_v30 = vunpack.c.l.b16 %v393_v21 }
  0x4b   : > { %503 = vmatpush.bf16.msra.mxu0 %v689_v11  ;;  %v430_v31 = vunpack.c.l.b16 %v394_v22  ;;  %v431_v32 = vunpack.c.l.b16 %v395_v23  ;;  %v432_v34 = vunpack.c.l.b16 %v396_v24  ;;  %vm442_vm4 = vcmask 1045509  }
  0x4c   : > { %v435_v33 = vsel %vm434_vm0, %v427_v27, %v426_v26  ;;  %v433_v36 = vunpack.c.l.b16 %v397_v25  ;;  %vm444_vm5 = vcmask 1046534   ;;  %vm446_vm6 = vcmask 1047559  }
  0x4d   : > { %v437_v35 = vsel %vm436_vm1, %v428_v29, %v435_v33 }
  0x4e   : > { %v439_v37 = vsel %vm438_vm2, %v429_v30, %v437_v35 }
  0x4f   : > { %504 = vmatpush.bf16.msra.mxu0 %v688_v28  ;;  %v441_v39 = vsel %vm440_vm3, %v430_v31, %v439_v37 }
  0x50   : > { %v443_v40 = vsel %vm442_vm4, %v431_v32, %v441_v39 }
  0x51   : > { %v445_v41 = vsel %vm444_vm5, %v432_v34, %v443_v40 }
  0x52   : > { %v447_v42 = vsel %vm446_vm6, %v433_v36, %v445_v41 }
  0x53   : > { %505 = vmatpush.bf16.msra.mxu0 %v687_v38  ;;  %v448_v43 = vpack.c.b16 %v447_v42, %v447_v42 }
  0x56   : > { %506 = vmatmul.bf16.vlgmr.msra.gmra.mxu0 %v448_v43 }
  0xd3   : > { %v507_v46 = vpop.f32.mrf.mxu0 }
  0xd4   : > { %v508_v47 = vadd.f32 %v798_v44, %v507_v46 }
  0xd6   : > { %v515_v48 = vmul.f32 %v799_v45, %v508_v47 }
  0xd8   : > { %516 = vst [vmem:[%s313_s19] sm:$0xff] %v515_v48 }
  0xd9   : > { %857 = shalt.err (!%p854_p13)
}
  0xda   : > { %718 = dma.vmem_to_hbm [thread:$0]  (%p1019_p8), %s533_s28, 128, %s535_s18, %s518_s23  }
  0xdb   : > { %v509_v49 = vpop.f32.mrf.mxu0 }
  0xdc PF: > { %p730_p0 = scmp.ge.s32.totalorder %s928_s22, 2  ;;  %s546_s2 = sand.u32 1, %s900_s15  }
  0xdd   : > { %s547_s14 = scalar_lea.sflag [#allocation5], %s546_s2 }
  0xde   : > { %p725_p1 = pnand %p730_p0, %p1023_p9 }
  0xe0   : > { %p726_p2 = pneg %p725_p1 }
  0xe2   : > { %895 = dma.done.wait (%p726_p2), %s547_s14, 128  }
  0xe3   : > { %897 = vsyncadd (%p726_p2), %s547_s14, 4294967168  ;;  %s18_s22 = sadd.s32 1, %s928_s22   ;;  %s1145_s30 = sld [smem:[#allocation9_spill]] }
  0xe4   : > { %p15_p4 = scmp.ge.s32.totalorder %s18_s22, 6   ;;  %s1146_s15 = smov %s904_s16 }
  0xe5   : > { %s1147_s16 = smov %s908_s17  ;;  %s1148_s17 = smov %s1040_s10 }
  0xe6   : > { %s1149_s18 = smov %s920_s20  ;;  %s1150_s19 = smov %s924_s21 }
  0xe7   : > { %s1151_s20 = smov %s1154_s25  ;;  %17 = sbr.rel (!%p15_p4) target bundleno = 8 (0x8), region = 125 }
  0xe9   : > { %s1152_s21 = smov %s1145_s30 }
  0xec   :  { %553 = vsyncpa [#allocation4], 1 }
  0xed   :  { %555 = vsyncpa [#allocation4 + $0x1], 1 }
  0xee   :  { %556 = vsyncpa [#allocation5], 1 }
  0xef   :  { %558 = vsyncpa [#allocation5 + $0x1], 1 }

</bundles_post_ra>
